<compile_context>
chip_gen: v7x
topology: tpu7x:2x2x1
jax: 0.10.0
libtpu: 0.0.40
codegen_flags: <defaults>
</compile_context>

<pallas_src>
import math

import jax
import jax.numpy as jnp
from jax.experimental import pallas as pl
from jax.experimental.pallas import tpu as pltpu

_LN_EPS = 1e-5  # PyTorch nn.LayerNorm default


def _round_up(x, m):
    return ((x + m - 1) // m) * m


def _make_denoise_kernel(time_mlp_in_kernel: bool, mc: int):
    """Build the fused kernel body.

    time_mlp_in_kernel: if True, lanes [mc:] of the input block carry the raw
      sinusoidal features and the 2-layer time MLP runs here on the MXU; if
      False, the wrapper already substituted the shared time embedding.
    mc: model_dims + context_dims (lane offset of the time features).
    """

    def kernel(x_ref, *refs):
        if time_mlp_in_kernel:
            (wt1_ref, bt1_ref, wt2_ref, bt2_ref,
             lnin_w_ref, lnin_b_ref,
             w1_ref, b1_ref, ln1_w_ref, ln1_b_ref,
             w2_ref, b2_ref, ln2_w_ref, ln2_b_ref,
             w3_ref, b3_ref, o_ref) = refs
        else:
            (lnin_w_ref, lnin_b_ref,
             w1_ref, b1_ref, ln1_w_ref, ln1_b_ref,
             w2_ref, b2_ref, ln2_w_ref, ln2_b_ref,
             w3_ref, b3_ref, o_ref) = refs

        def linear(x_f32, w_ref, b_ref):
            # Weights pre-transposed to (in, out) by the wrapper -> plain x @ W
            # on the MXU, f32 accumulation. Cast activation to the weight dtype
            # so bf16 params take the native bf16 MXU path.
            y = jnp.dot(x_f32.astype(w_ref.dtype), w_ref[...],
                        preferred_element_type=jnp.float32)
            return y + b_ref[...].astype(jnp.float32)

        def layer_norm(x_f32, w_ref, b_ref):
            mu = jnp.mean(x_f32, axis=-1, keepdims=True)
            xc = x_f32 - mu
            var = jnp.mean(xc * xc, axis=-1, keepdims=True)
            inv = jax.lax.rsqrt(var + _LN_EPS)          # EUP slot, not VALU
            return (xc * inv) * w_ref[...].astype(jnp.float32) \
                + b_ref[...].astype(jnp.float32)

        x_in = x_ref[...].astype(jnp.float32)

        if time_mlp_in_kernel:
            pe = x_in[:, mc:]
            te = jnp.maximum(linear(pe, wt1_ref, bt1_ref), 0.0)
            te = linear(te, wt2_ref, bt2_ref)
            x = jnp.concatenate([x_in[:, :mc], te], axis=-1)
        else:
            x = x_in                                    # already [z | ctx | time_emb]

        x = layer_norm(x, lnin_w_ref, lnin_b_ref)
        x = jnp.maximum(linear(x, w1_ref, b1_ref), 0.0)
        x = layer_norm(x, ln1_w_ref, ln1_b_ref)
        x = jnp.maximum(linear(x, w2_ref, b2_ref), 0.0)
        x = layer_norm(x, ln2_w_ref, ln2_b_ref)
        o_ref[...] = linear(x, w3_ref, b3_ref).astype(o_ref.dtype)

    return kernel


def denoise_net_forward(z, tau, context, params, *, tm_rows=1024):
    """DenoiseNet forward.

    z: (B, model_dims); tau: scalar / (1,) / (B,); context: (B, context_dims).
    params: PyTorch-layout Linear weights (out_features, in_features), 1-D
    biases and LayerNorm params. Returns (B, model_dims).
    """
    B, model_dims = z.shape
    ctx_dims = context.shape[-1]
    t_dim = params["time_w1"].shape[1]          # time_embedding_dim
    mc = model_dims + ctx_dims
    d_in = mc + t_dim
    h1 = params["fc1_w"].shape[0]               # 4 * model_dims
    h2 = params["fc2_w"].shape[0]               # 2 * model_dims
    assert params["fc1_w"].shape[1] == d_in

    out_pad = _round_up(max(model_dims, 128), 128)   # lane-dense output width

    # ---- time features (matches PyTorch: pe[:,0::2]=sin, pe[:,1::2]=cos) ----
    tau_arr = jnp.atleast_1d(jnp.asarray(tau, dtype=jnp.float32)).reshape(-1)
    tau_shared = int(tau_arr.shape[0]) == 1
    time_mlp_in_kernel = not tau_shared

    div_term = jnp.exp(jnp.arange(0, t_dim, 2, dtype=jnp.float32)
                       * (-math.log(10000.0) / t_dim))

    def sinusoid(tau_vec):
        arg = (tau_vec * 1000.0)[:, None] * div_term[None, :]
        return jnp.stack([jnp.sin(arg), jnp.cos(arg)],
                         axis=-1).reshape(tau_vec.shape[0], t_dim)

    hp = jax.lax.Precision.HIGHEST
    if tau_shared:
        # Shared tau: the time-embed MLP is identical for every row -> compute
        # it once on a single row here (negligible) and broadcast.
        pe1 = sinusoid(tau_arr)                                          # (1, T)
        te1 = jnp.maximum(
            jnp.dot(pe1, params["time_w1"].T.astype(jnp.float32), precision=hp)
            + params["time_b1"].astype(jnp.float32), 0.0)
        te1 = (jnp.dot(te1, params["time_w2"].T.astype(jnp.float32), precision=hp)
               + params["time_b2"].astype(jnp.float32))
        tail = jnp.broadcast_to(te1.astype(jnp.float32), (B, t_dim))
    else:
        tail = sinusoid(jnp.broadcast_to(tau_arr, (B,)))                 # (B, T)

    # Single lane-dense row input: [z | context | pe-or-time_emb]  (B, d_in).
    x_in = jnp.concatenate(
        [z.astype(jnp.float32), context.astype(jnp.float32), tail], axis=-1)

    # ---- row tiling: big tile, sublane-aligned, grid >= 2 when B allows ----
    itemsize = jnp.dtype(z.dtype).itemsize
    sub = {4: 8, 2: 16, 1: 32}.get(itemsize, 8)      # sublane packing of output
    tm = max(sub, _round_up(min(tm_rows, B), sub))
    if B > sub:
        tm = min(tm, max(sub, _round_up((B + 1) // 2, sub)))  # keep >=2 steps
    grid = (pl.cdiv(B, tm),)                         # ragged last block is OK

    # ---- params: pre-transpose to (in, out) once; pad fc3 to lane-dense ----
    def wt(w):
        return jnp.transpose(w)

    def b2d(b, n=None):
        b = b.reshape(1, -1)
        if n is not None and b.shape[1] != n:
            b = jnp.pad(b, ((0, 0), (0, n - b.shape[1])))
        return b

    fc3_wt = jnp.transpose(params["fc3_w"])          # (h2, model_dims)
    if out_pad != model_dims:
        fc3_wt = jnp.pad(fc3_wt, ((0, 0), (0, out_pad - model_dims)))
    fc3_b = b2d(params["fc3_b"], out_pad)

    common_args = (
        b2d(params["ln_in_w"]), b2d(params["ln_in_b"]),
        wt(params["fc1_w"]), b2d(params["fc1_b"]),
        b2d(params["ln1_w"]), b2d(params["ln1_b"]),
        wt(params["fc2_w"]), b2d(params["fc2_b"]),
        b2d(params["ln2_w"]), b2d(params["ln2_b"]),
        fc3_wt, fc3_b,
    )
    if time_mlp_in_kernel:
        weight_args = (wt(params["time_w1"]), b2d(params["time_b1"]),
                       wt(params["time_w2"]), b2d(params["time_b2"])) + common_args
    else:
        weight_args = common_args

    def full_spec(a):
        # Constant block index -> DMA'd once, resident in VMEM across the grid.
        return pl.BlockSpec(a.shape, lambda i: (0, 0))

    in_specs = [pl.BlockSpec((tm, d_in), lambda i: (i, 0))] \
        + [full_spec(a) for a in weight_args]
    out_specs = pl.BlockSpec((tm, out_pad), lambda i: (i, 0))

    flops_row = 2 * (d_in * h1 + h1 * h2 + h2 * out_pad)
    if time_mlp_in_kernel:
        flops_row += 2 * (t_dim * 4 * t_dim + 4 * t_dim * t_dim)
    bytes_accessed = (int(x_in.size) * 4
                      + sum(int(a.size) * a.dtype.itemsize for a in weight_args)
                      + B * out_pad * itemsize)

    out = pl.pallas_call(
        _make_denoise_kernel(time_mlp_in_kernel, mc),
        out_shape=jax.ShapeDtypeStruct((B, out_pad), z.dtype),
        grid_spec=pltpu.PrefetchScalarGridSpec(
            num_scalar_prefetch=0,
            grid=grid,
            in_specs=in_specs,
            out_specs=out_specs,
        ),
        compiler_params=pltpu.CompilerParams(
            # Rows are independent -> shard the row axis across TensorCores.
            dimension_semantics=(pltpu.PARALLEL,),
        ),
        cost_estimate=pl.CostEstimate(
            flops=int(B * flops_row),
            transcendentals=int(3 * B),                 # rsqrt per LayerNorm row
            bytes_accessed=int(bytes_accessed)),
    )(x_in, *weight_args)

    if out_pad != model_dims:
        out = out[:, :model_dims]
    return out


# ----------------------------- test harness ---------------------------------

def _linear_init(key, out_f, in_f):
    kw, kb = jax.random.split(key)
    bound = 1.0 / math.sqrt(in_f)
    w = jax.random.uniform(kw, (out_f, in_f), minval=-bound, maxval=bound,
                           dtype=jnp.float32)
    b = jax.random.uniform(kb, (out_f,), minval=-bound, maxval=bound,
                           dtype=jnp.float32)
    return w, b


def denoise_net_reference(z, tau, context, params):
    """Pure-JAX reference mirroring the PyTorch forward."""
    B = z.shape[0]
    t_dim = params["time_w1"].shape[1]
    tau_b = jnp.broadcast_to(
        jnp.atleast_1d(jnp.asarray(tau, jnp.float32)).reshape(-1), (B,))
    div_term = jnp.exp(jnp.arange(0, t_dim, 2, dtype=jnp.float32)
                       * (-math.log(10000.0) / t_dim))
    arg = (tau_b * 1000.0)[:, None] * div_term[None, :]
    pe = jnp.stack([jnp.sin(arg), jnp.cos(arg)], axis=-1).reshape(B, t_dim)

    hp = jax.lax.Precision.HIGHEST

    def lin(x, w, b):
        return jnp.dot(x, w.T, precision=hp) + b

    def ln(x, w, b):
        mu = jnp.mean(x, -1, keepdims=True)
        var = jnp.mean((x - mu) ** 2, -1, keepdims=True)
        return (x - mu) * jax.lax.rsqrt(var + _LN_EPS) * w + b

    te = lin(jnp.maximum(lin(pe, params["time_w1"], params["time_b1"]), 0.0),
             params["time_w2"], params["time_b2"])
    x = jnp.concatenate([z, context, te], axis=-1)
    x = ln(x, params["ln_in_w"], params["ln_in_b"])
    x = jnp.maximum(lin(x, params["fc1_w"], params["fc1_b"]), 0.0)
    x = ln(x, params["ln1_w"], params["ln1_b"])
    x = jnp.maximum(lin(x, params["fc2_w"], params["fc2_b"]), 0.0)
    x = ln(x, params["ln2_w"], params["ln2_b"])
    return lin(x, params["fc3_w"], params["fc3_b"])


if __name__ == "__main__":
    batch = 40
    model_dims, context_dims, time_embedding_dim = 32, 32, 64
    d_in = model_dims + context_dims + time_embedding_dim   # 128 (lane-dense)

    key = jax.random.PRNGKey(0)
    ks = jax.random.split(key, 12)

    z = jax.random.normal(ks[0], (batch, model_dims), dtype=jnp.float32)
    context = jax.random.normal(ks[1], (batch, context_dims), dtype=jnp.float32)
    tau_vec = jax.random.uniform(ks[2], (batch,), dtype=jnp.float32)
    tau_scalar = jnp.float32(0.37)

    params = {}
    params["time_w1"], params["time_b1"] = _linear_init(
        ks[3], 4 * time_embedding_dim, time_embedding_dim)
    params["time_w2"], params["time_b2"] = _linear_init(
        ks[4], time_embedding_dim, 4 * time_embedding_dim)
    params["fc1_w"], params["fc1_b"] = _linear_init(ks[5], 4 * model_dims, d_in)
    params["fc2_w"], params["fc2_b"] = _linear_init(
        ks[6], 2 * model_dims, 4 * model_dims)
    params["fc3_w"], params["fc3_b"] = _linear_init(
        ks[7], model_dims, 2 * model_dims)
    for name, dim, kk in (("ln_in", d_in, ks[8]),
                          ("ln1", 4 * model_dims, ks[9]),
                          ("ln2", 2 * model_dims, ks[10])):
        kw2, kb2 = jax.random.split(kk)
        params[f"{name}_w"] = 1.0 + 0.1 * jax.random.normal(kw2, (dim,),
                                                            dtype=jnp.float32)
        params[f"{name}_b"] = 0.1 * jax.random.normal(kb2, (dim,),
                                                      dtype=jnp.float32)

    # Path 1: per-row tau (time MLP fused in the kernel). Small tile so the
    # demo iterates the grid (3 steps) and exercises the ragged last block.
    y = denoise_net_forward(z, tau_vec, context, params, tm_rows=16)
    y = jax.block_until_ready(y)
    y_ref = denoise_net_reference(z, tau_vec, context, params)
    assert y.shape == (batch, model_dims)
    err1 = float(jnp.max(jnp.abs(y - y_ref)))
    assert jnp.allclose(y, y_ref, atol=1e-3, rtol=1e-3), err1

    # Path 2: shared scalar tau (time MLP hoisted out of the kernel), default tile.
    y2 = denoise_net_forward(z, tau_scalar, context, params)
    y2 = jax.block_until_ready(y2)
    y2_ref = denoise_net_reference(z, tau_scalar, context, params)
    assert y2.shape == (batch, model_dims)
    err2 = float(jnp.max(jnp.abs(y2 - y2_ref)))
    assert jnp.allclose(y2, y2_ref, atol=1e-3, rtol=1e-3), err2

    print("KERNEL_OK")
</pallas_src>

<mosaic_0001>
module attributes {stable_mosaic.version = 11 : i64} {
  func.func @kernel(%arg0: i32, %arg1: memref<16x128xf32, #tpu.memory_space<vmem>>, %arg2: memref<64x256xf32, #tpu.memory_space<vmem>>, %arg3: memref<1x256xf32, #tpu.memory_space<vmem>>, %arg4: memref<256x64xf32, #tpu.memory_space<vmem>>, %arg5: memref<1x64xf32, #tpu.memory_space<vmem>>, %arg6: memref<1x128xf32, #tpu.memory_space<vmem>>, %arg7: memref<1x128xf32, #tpu.memory_space<vmem>>, %arg8: memref<128x128xf32, #tpu.memory_space<vmem>>, %arg9: memref<1x128xf32, #tpu.memory_space<vmem>>, %arg10: memref<1x128xf32, #tpu.memory_space<vmem>>, %arg11: memref<1x128xf32, #tpu.memory_space<vmem>>, %arg12: memref<128x64xf32, #tpu.memory_space<vmem>>, %arg13: memref<1x64xf32, #tpu.memory_space<vmem>>, %arg14: memref<1x64xf32, #tpu.memory_space<vmem>>, %arg15: memref<1x64xf32, #tpu.memory_space<vmem>>, %arg16: memref<64x128xf32, #tpu.memory_space<vmem>>, %arg17: memref<1x128xf32, #tpu.memory_space<vmem>>, %arg18: memref<16x128xf32, #tpu.memory_space<vmem>>) attributes {dimension_semantics = [#tpu.dimension_semantics<parallel>], iteration_bounds = array<i64: 3>, scalar_prefetch = 0 : i64, scratch_operands = 0 : i64, tpu.core_type = #tpu.core_type<tc>, window_params = [{transform_indices = @transform_0, window_bounds = array<i64: 16, 128>}, {pipeline_mode = #tpu.pipeline_mode<synchronous>, transform_indices = @transform_1, window_bounds = array<i64: 64, 256>}, {pipeline_mode = #tpu.pipeline_mode<synchronous>, transform_indices = @transform_2, window_bounds = array<i64: 1, 256>}, {pipeline_mode = #tpu.pipeline_mode<synchronous>, transform_indices = @transform_3, window_bounds = array<i64: 256, 64>}, {pipeline_mode = #tpu.pipeline_mode<synchronous>, transform_indices = @transform_4, window_bounds = array<i64: 1, 64>}, {pipeline_mode = #tpu.pipeline_mode<synchronous>, transform_indices = @transform_5, window_bounds = array<i64: 1, 128>}, {pipeline_mode = #tpu.pipeline_mode<synchronous>, transform_indices = @transform_6, window_bounds = array<i64: 1, 128>}, {pipeline_mode = #tpu.pipeline_mode<synchronous>, transform_indices = @transform_7, window_bounds = array<i64: 128, 128>}, {pipeline_mode = #tpu.pipeline_mode<synchronous>, transform_indices = @transform_8, window_bounds = array<i64: 1, 128>}, {pipeline_mode = #tpu.pipeline_mode<synchronous>, transform_indices = @transform_9, window_bounds = array<i64: 1, 128>}, {pipeline_mode = #tpu.pipeline_mode<synchronous>, transform_indices = @transform_10, window_bounds = array<i64: 1, 128>}, {pipeline_mode = #tpu.pipeline_mode<synchronous>, transform_indices = @transform_11, window_bounds = array<i64: 128, 64>}, {pipeline_mode = #tpu.pipeline_mode<synchronous>, transform_indices = @transform_12, window_bounds = array<i64: 1, 64>}, {pipeline_mode = #tpu.pipeline_mode<synchronous>, transform_indices = @transform_13, window_bounds = array<i64: 1, 64>}, {pipeline_mode = #tpu.pipeline_mode<synchronous>, transform_indices = @transform_14, window_bounds = array<i64: 1, 64>}, {pipeline_mode = #tpu.pipeline_mode<synchronous>, transform_indices = @transform_15, window_bounds = array<i64: 64, 128>}, {pipeline_mode = #tpu.pipeline_mode<synchronous>, transform_indices = @transform_16, window_bounds = array<i64: 1, 128>}, {transform_indices = @transform_17, window_bounds = array<i64: 16, 128>}]} {
    %c0 = arith.constant 0 : index
    %c0_0 = arith.constant 0 : index
    %0 = vector.load %arg1[%c0, %c0_0] : memref<16x128xf32, #tpu.memory_space<vmem>>, vector<16x128xf32>
    %1 = vector.extract_strided_slice %0 {offsets = [0, 64], sizes = [16, 64], strides = [1, 1]} : vector<16x128xf32> to vector<16x64xf32>
    %c0_1 = arith.constant 0 : index
    %c0_2 = arith.constant 0 : index
    %2 = vector.load %arg2[%c0_1, %c0_2] : memref<64x256xf32, #tpu.memory_space<vmem>>, vector<64x256xf32>
    %cst = arith.constant dense<0.000000e+00> : vector<16x256xf32>
    %3 = tpu.matmul %1, %2, %cst {dimension_numbers = #tpu.dot_dimension_numbers<[1], [0], [0], [1], [0, 0, 1, 1], [], []>} : vector<16x64xf32>, vector<64x256xf32>, vector<16x256xf32> -> vector<16x256xf32>
    %c0_3 = arith.constant 0 : index
    %c0_4 = arith.constant 0 : index
    %4 = vector.load %arg3[%c0_3, %c0_4] : memref<1x256xf32, #tpu.memory_space<vmem>>, vector<1x256xf32>
    %5 = vector.broadcast %4 : vector<1x256xf32> to vector<16x256xf32>
    %6 = arith.addf %3, %5 : vector<16x256xf32>
    %cst_5 = arith.constant 0.000000e+00 : f32
    %7 = vector.broadcast %cst_5 : f32 to vector<16x256xf32>
    %8 = arith.maximumf %6, %7 : vector<16x256xf32>
    %c0_6 = arith.constant 0 : index
    %c0_7 = arith.constant 0 : index
    %9 = vector.load %arg4[%c0_6, %c0_7] : memref<256x64xf32, #tpu.memory_space<vmem>>, vector<256x64xf32>
    %cst_8 = arith.constant dense<0.000000e+00> : vector<16x64xf32>
    %10 = tpu.matmul %8, %9, %cst_8 {dimension_numbers = #tpu.dot_dimension_numbers<[1], [0], [0], [1], [0, 0, 1, 1], [], []>} : vector<16x256xf32>, vector<256x64xf32>, vector<16x64xf32> -> vector<16x64xf32>
    %c0_9 = arith.constant 0 : index
    %c0_10 = arith.constant 0 : index
    %11 = vector.load %arg5[%c0_9, %c0_10] : memref<1x64xf32, #tpu.memory_space<vmem>>, vector<1x64xf32>
    %12 = vector.broadcast %11 : vector<1x64xf32> to vector<16x64xf32>
    %13 = arith.addf %10, %12 : vector<16x64xf32>
    %14 = vector.extract_strided_slice %0 {offsets = [0, 0], sizes = [16, 64], strides = [1, 1]} : vector<16x128xf32> to vector<16x64xf32>
    %15 = tpu.concatenate %14, %13 in 1 : vector<16x64xf32>, vector<16x64xf32> -> vector<16x128xf32>
    %cst_11 = arith.constant dense<0.000000e+00> : vector<16xf32>
    %16 = vector.multi_reduction <add>, %15, %cst_11 [1] : vector<16x128xf32> to vector<16xf32>
    %17 = vector.shape_cast %16 : vector<16xf32> to vector<16x1xf32>
    %cst_12 = arith.constant 1.280000e+02 : f32
    %18 = vector.broadcast %cst_12 : f32 to vector<16x1xf32>
    %19 = arith.divf %17, %18 : vector<16x1xf32>
    %20 = vector.broadcast %19 : vector<16x1xf32> to vector<16x128xf32>
    %21 = arith.subf %15, %20 : vector<16x128xf32>
    %22 = arith.mulf %21, %21 : vector<16x128xf32>
    %cst_13 = arith.constant dense<0.000000e+00> : vector<16xf32>
    %23 = vector.multi_reduction <add>, %22, %cst_13 [1] : vector<16x128xf32> to vector<16xf32>
    %24 = vector.shape_cast %23 : vector<16xf32> to vector<16x1xf32>
    %cst_14 = arith.constant 1.280000e+02 : f32
    %25 = vector.broadcast %cst_14 : f32 to vector<16x1xf32>
    %26 = arith.divf %24, %25 : vector<16x1xf32>
    %cst_15 = arith.constant 9.99999974E-6 : f32
    %27 = vector.broadcast %cst_15 : f32 to vector<16x1xf32>
    %28 = arith.addf %26, %27 : vector<16x1xf32>
    %29 = math.rsqrt %28 : vector<16x1xf32>
    %30 = vector.broadcast %29 : vector<16x1xf32> to vector<16x128xf32>
    %31 = arith.mulf %21, %30 : vector<16x128xf32>
    %c0_16 = arith.constant 0 : index
    %c0_17 = arith.constant 0 : index
    %32 = vector.load %arg6[%c0_16, %c0_17] : memref<1x128xf32, #tpu.memory_space<vmem>>, vector<1x128xf32>
    %33 = vector.broadcast %32 : vector<1x128xf32> to vector<16x128xf32>
    %34 = arith.mulf %31, %33 : vector<16x128xf32>
    %c0_18 = arith.constant 0 : index
    %c0_19 = arith.constant 0 : index
    %35 = vector.load %arg7[%c0_18, %c0_19] : memref<1x128xf32, #tpu.memory_space<vmem>>, vector<1x128xf32>
    %36 = vector.broadcast %35 : vector<1x128xf32> to vector<16x128xf32>
    %37 = arith.addf %34, %36 : vector<16x128xf32>
    %c0_20 = arith.constant 0 : index
    %c0_21 = arith.constant 0 : index
    %38 = vector.load %arg8[%c0_20, %c0_21] : memref<128x128xf32, #tpu.memory_space<vmem>>, vector<128x128xf32>
    %cst_22 = arith.constant dense<0.000000e+00> : vector<16x128xf32>
    %39 = tpu.matmul %37, %38, %cst_22 {dimension_numbers = #tpu.dot_dimension_numbers<[1], [0], [0], [1], [0, 0, 1, 1], [], []>} : vector<16x128xf32>, vector<128x128xf32>, vector<16x128xf32> -> vector<16x128xf32>
    %c0_23 = arith.constant 0 : index
    %c0_24 = arith.constant 0 : index
    %40 = vector.load %arg9[%c0_23, %c0_24] : memref<1x128xf32, #tpu.memory_space<vmem>>, vector<1x128xf32>
    %41 = vector.broadcast %40 : vector<1x128xf32> to vector<16x128xf32>
    %42 = arith.addf %39, %41 : vector<16x128xf32>
    %cst_25 = arith.constant 0.000000e+00 : f32
    %43 = vector.broadcast %cst_25 : f32 to vector<16x128xf32>
    %44 = arith.maximumf %42, %43 : vector<16x128xf32>
    %cst_26 = arith.constant dense<0.000000e+00> : vector<16xf32>
    %45 = vector.multi_reduction <add>, %44, %cst_26 [1] : vector<16x128xf32> to vector<16xf32>
    %46 = vector.shape_cast %45 : vector<16xf32> to vector<16x1xf32>
    %cst_27 = arith.constant 1.280000e+02 : f32
    %47 = vector.broadcast %cst_27 : f32 to vector<16x1xf32>
    %48 = arith.divf %46, %47 : vector<16x1xf32>
    %49 = vector.broadcast %48 : vector<16x1xf32> to vector<16x128xf32>
    %50 = arith.subf %44, %49 : vector<16x128xf32>
    %51 = arith.mulf %50, %50 : vector<16x128xf32>
    %cst_28 = arith.constant dense<0.000000e+00> : vector<16xf32>
    %52 = vector.multi_reduction <add>, %51, %cst_28 [1] : vector<16x128xf32> to vector<16xf32>
    %53 = vector.shape_cast %52 : vector<16xf32> to vector<16x1xf32>
    %cst_29 = arith.constant 1.280000e+02 : f32
    %54 = vector.broadcast %cst_29 : f32 to vector<16x1xf32>
    %55 = arith.divf %53, %54 : vector<16x1xf32>
    %cst_30 = arith.constant 9.99999974E-6 : f32
    %56 = vector.broadcast %cst_30 : f32 to vector<16x1xf32>
    %57 = arith.addf %55, %56 : vector<16x1xf32>
    %58 = math.rsqrt %57 : vector<16x1xf32>
    %59 = vector.broadcast %58 : vector<16x1xf32> to vector<16x128xf32>
    %60 = arith.mulf %50, %59 : vector<16x128xf32>
    %c0_31 = arith.constant 0 : index
    %c0_32 = arith.constant 0 : index
    %61 = vector.load %arg10[%c0_31, %c0_32] : memref<1x128xf32, #tpu.memory_space<vmem>>, vector<1x128xf32>
    %62 = vector.broadcast %61 : vector<1x128xf32> to vector<16x128xf32>
    %63 = arith.mulf %60, %62 : vector<16x128xf32>
    %c0_33 = arith.constant 0 : index
    %c0_34 = arith.constant 0 : index
    %64 = vector.load %arg11[%c0_33, %c0_34] : memref<1x128xf32, #tpu.memory_space<vmem>>, vector<1x128xf32>
    %65 = vector.broadcast %64 : vector<1x128xf32> to vector<16x128xf32>
    %66 = arith.addf %63, %65 : vector<16x128xf32>
    %c0_35 = arith.constant 0 : index
    %c0_36 = arith.constant 0 : index
    %67 = vector.load %arg12[%c0_35, %c0_36] : memref<128x64xf32, #tpu.memory_space<vmem>>, vector<128x64xf32>
    %cst_37 = arith.constant dense<0.000000e+00> : vector<16x64xf32>
    %68 = tpu.matmul %66, %67, %cst_37 {dimension_numbers = #tpu.dot_dimension_numbers<[1], [0], [0], [1], [0, 0, 1, 1], [], []>} : vector<16x128xf32>, vector<128x64xf32>, vector<16x64xf32> -> vector<16x64xf32>
    %c0_38 = arith.constant 0 : index
    %c0_39 = arith.constant 0 : index
    %69 = vector.load %arg13[%c0_38, %c0_39] : memref<1x64xf32, #tpu.memory_space<vmem>>, vector<1x64xf32>
    %70 = vector.broadcast %69 : vector<1x64xf32> to vector<16x64xf32>
    %71 = arith.addf %68, %70 : vector<16x64xf32>
    %cst_40 = arith.constant 0.000000e+00 : f32
    %72 = vector.broadcast %cst_40 : f32 to vector<16x64xf32>
    %73 = arith.maximumf %71, %72 : vector<16x64xf32>
    %cst_41 = arith.constant dense<0.000000e+00> : vector<16xf32>
    %74 = vector.multi_reduction <add>, %73, %cst_41 [1] : vector<16x64xf32> to vector<16xf32>
    %75 = vector.shape_cast %74 : vector<16xf32> to vector<16x1xf32>
    %cst_42 = arith.constant 6.400000e+01 : f32
    %76 = vector.broadcast %cst_42 : f32 to vector<16x1xf32>
    %77 = arith.divf %75, %76 : vector<16x1xf32>
    %78 = vector.broadcast %77 : vector<16x1xf32> to vector<16x64xf32>
    %79 = arith.subf %73, %78 : vector<16x64xf32>
    %80 = arith.mulf %79, %79 : vector<16x64xf32>
    %cst_43 = arith.constant dense<0.000000e+00> : vector<16xf32>
    %81 = vector.multi_reduction <add>, %80, %cst_43 [1] : vector<16x64xf32> to vector<16xf32>
    %82 = vector.shape_cast %81 : vector<16xf32> to vector<16x1xf32>
    %cst_44 = arith.constant 6.400000e+01 : f32
    %83 = vector.broadcast %cst_44 : f32 to vector<16x1xf32>
    %84 = arith.divf %82, %83 : vector<16x1xf32>
    %cst_45 = arith.constant 9.99999974E-6 : f32
    %85 = vector.broadcast %cst_45 : f32 to vector<16x1xf32>
    %86 = arith.addf %84, %85 : vector<16x1xf32>
    %87 = math.rsqrt %86 : vector<16x1xf32>
    %88 = vector.broadcast %87 : vector<16x1xf32> to vector<16x64xf32>
    %89 = arith.mulf %79, %88 : vector<16x64xf32>
    %c0_46 = arith.constant 0 : index
    %c0_47 = arith.constant 0 : index
    %90 = vector.load %arg14[%c0_46, %c0_47] : memref<1x64xf32, #tpu.memory_space<vmem>>, vector<1x64xf32>
    %91 = vector.broadcast %90 : vector<1x64xf32> to vector<16x64xf32>
    %92 = arith.mulf %89, %91 : vector<16x64xf32>
    %c0_48 = arith.constant 0 : index
    %c0_49 = arith.constant 0 : index
    %93 = vector.load %arg15[%c0_48, %c0_49] : memref<1x64xf32, #tpu.memory_space<vmem>>, vector<1x64xf32>
    %94 = vector.broadcast %93 : vector<1x64xf32> to vector<16x64xf32>
    %95 = arith.addf %92, %94 : vector<16x64xf32>
    %c0_50 = arith.constant 0 : index
    %c0_51 = arith.constant 0 : index
    %96 = vector.load %arg16[%c0_50, %c0_51] : memref<64x128xf32, #tpu.memory_space<vmem>>, vector<64x128xf32>
    %cst_52 = arith.constant dense<0.000000e+00> : vector<16x128xf32>
    %97 = tpu.matmul %95, %96, %cst_52 {dimension_numbers = #tpu.dot_dimension_numbers<[1], [0], [0], [1], [0, 0, 1, 1], [], []>} : vector<16x64xf32>, vector<64x128xf32>, vector<16x128xf32> -> vector<16x128xf32>
    %c0_53 = arith.constant 0 : index
    %c0_54 = arith.constant 0 : index
    %98 = vector.load %arg17[%c0_53, %c0_54] : memref<1x128xf32, #tpu.memory_space<vmem>>, vector<1x128xf32>
    %99 = vector.broadcast %98 : vector<1x128xf32> to vector<16x128xf32>
    %100 = arith.addf %97, %99 : vector<16x128xf32>
    %c0_55 = arith.constant 0 : index
    %c0_56 = arith.constant 0 : index
    %101 = vector.load %arg18[%c0_55, %c0_56] : memref<16x128xf32, #tpu.memory_space<vmem>>, vector<16x128xf32>
    tpu.vector_store %arg18[%c0_55, %c0_56], %100 {strides = array<i32>} : memref<16x128xf32, #tpu.memory_space<vmem>>, vector<16x128xf32>,
    return
  }
  func.func @transform_0(%arg0: i32) -> (i32, i32) {
    %c0_i32 = arith.constant 0 : i32
    %c0_i32_0 = arith.constant 0 : i32
    return %arg0, %c0_i32 : i32, i32
  }
  func.func @transform_1(%arg0: i32) -> (i32, i32) {
    %c0_i32 = arith.constant 0 : i32
    %c0_i32_0 = arith.constant 0 : i32
    %c0_i32_1 = arith.constant 0 : i32
    return %c0_i32, %c0_i32_0 : i32, i32
  }
  func.func @transform_2(%arg0: i32) -> (i32, i32) {
    %c0_i32 = arith.constant 0 : i32
    %c0_i32_0 = arith.constant 0 : i32
    %c0_i32_1 = arith.constant 0 : i32
    return %c0_i32, %c0_i32_0 : i32, i32
  }
  func.func @transform_3(%arg0: i32) -> (i32, i32) {
    %c0_i32 = arith.constant 0 : i32
    %c0_i32_0 = arith.constant 0 : i32
    %c0_i32_1 = arith.constant 0 : i32
    return %c0_i32, %c0_i32_0 : i32, i32
  }
  func.func @transform_4(%arg0: i32) -> (i32, i32) {
    %c0_i32 = arith.constant 0 : i32
    %c0_i32_0 = arith.constant 0 : i32
    %c0_i32_1 = arith.constant 0 : i32
    return %c0_i32, %c0_i32_0 : i32, i32
  }
  func.func @transform_5(%arg0: i32) -> (i32, i32) {
    %c0_i32 = arith.constant 0 : i32
    %c0_i32_0 = arith.constant 0 : i32
    %c0_i32_1 = arith.constant 0 : i32
    return %c0_i32, %c0_i32_0 : i32, i32
  }
  func.func @transform_6(%arg0: i32) -> (i32, i32) {
    %c0_i32 = arith.constant 0 : i32
    %c0_i32_0 = arith.constant 0 : i32
    %c0_i32_1 = arith.constant 0 : i32
    return %c0_i32, %c0_i32_0 : i32, i32
  }
  func.func @transform_7(%arg0: i32) -> (i32, i32) {
    %c0_i32 = arith.constant 0 : i32
    %c0_i32_0 = arith.constant 0 : i32
    %c0_i32_1 = arith.constant 0 : i32
    return %c0_i32, %c0_i32_0 : i32, i32
  }
  func.func @transform_8(%arg0: i32) -> (i32, i32) {
    %c0_i32 = arith.constant 0 : i32
    %c0_i32_0 = arith.constant 0 : i32
    %c0_i32_1 = arith.constant 0 : i32
    return %c0_i32, %c0_i32_0 : i32, i32
  }
  func.func @transform_9(%arg0: i32) -> (i32, i32) {
    %c0_i32 = arith.constant 0 : i32
    %c0_i32_0 = arith.constant 0 : i32
    %c0_i32_1 = arith.constant 0 : i32
    return %c0_i32, %c0_i32_0 : i32, i32
  }
  func.func @transform_10(%arg0: i32) -> (i32, i32) {
    %c0_i32 = arith.constant 0 : i32
    %c0_i32_0 = arith.constant 0 : i32
    %c0_i32_1 = arith.constant 0 : i32
    return %c0_i32, %c0_i32_0 : i32, i32
  }
  func.func @transform_11(%arg0: i32) -> (i32, i32) {
    %c0_i32 = arith.constant 0 : i32
    %c0_i32_0 = arith.constant 0 : i32
    %c0_i32_1 = arith.constant 0 : i32
    return %c0_i32, %c0_i32_0 : i32, i32
  }
  func.func @transform_12(%arg0: i32) -> (i32, i32) {
    %c0_i32 = arith.constant 0 : i32
    %c0_i32_0 = arith.constant 0 : i32
    %c0_i32_1 = arith.constant 0 : i32
    return %c0_i32, %c0_i32_0 : i32, i32
  }
  func.func @transform_13(%arg0: i32) -> (i32, i32) {
    %c0_i32 = arith.constant 0 : i32
    %c0_i32_0 = arith.constant 0 : i32
    %c0_i32_1 = arith.constant 0 : i32
    return %c0_i32, %c0_i32_0 : i32, i32
  }
  func.func @transform_14(%arg0: i32) -> (i32, i32) {
    %c0_i32 = arith.constant 0 : i32
    %c0_i32_0 = arith.constant 0 : i32
    %c0_i32_1 = arith.constant 0 : i32
    return %c0_i32, %c0_i32_0 : i32, i32
  }
  func.func @transform_15(%arg0: i32) -> (i32, i32) {
    %c0_i32 = arith.constant 0 : i32
    %c0_i32_0 = arith.constant 0 : i32
    %c0_i32_1 = arith.constant 0 : i32
    return %c0_i32, %c0_i32_0 : i32, i32
  }
  func.func @transform_16(%arg0: i32) -> (i32, i32) {
    %c0_i32 = arith.constant 0 : i32
    %c0_i32_0 = arith.constant 0 : i32
    %c0_i32_1 = arith.constant 0 : i32
    return %c0_i32, %c0_i32_0 : i32, i32
  }
  func.func @transform_17(%arg0: i32) -> (i32, i32) {
    %c0_i32 = arith.constant 0 : i32
    %c0_i32_0 = arith.constant 0 : i32
    return %arg0, %c0_i32 : i32, i32
  }
}

</mosaic_0001>

<bundles_post_ra>
// kernel: tpu_custom_call.1
= control target key start
LH: loop header
LB: loop body
LE: loop exit
PB: predicated region body
PF: predicated region fallthrough
CT: control target
= control target key end

     0   :  { %s2309_s0 = inlined_call_operand.vmem [shape: f32[40,128], index: 0, kind: input, shape index: {}]   ;;  %s2310_s1 = inlined_call_operand.vmem [shape: f32[64,256], index: 1, kind: input, shape index: {}]   ;;  %s2311_s2 = inlined_call_operand.vmem [shape: f32[1,256], index: 2, kind: input, shape index: {}]   ;;  %s2312_s3 = inlined_call_operand.vmem [shape: f32[256,64], index: 3, kind: input, shape index: {}]   ;;  %s2313_s4 = inlined_call_operand.vmem [shape: f32[1,64], index: 4, kind: input, shape index: {}]   ;;  %s2314_s5 = inlined_call_operand.vmem [shape: f32[1,128], index: 5, kind: input, shape index: {}]   ;;  %s2315_s6 = inlined_call_operand.vmem [shape: f32[1,128], index: 6, kind: input, shape index: {}]   ;;  %s2316_s7 = inlined_call_operand.vmem [shape: f32[128,128], index: 7, kind: input, shape index: {}]   ;;  %s2317_s8 = inlined_call_operand.vmem [shape: f32[1,128], index: 8, kind: input, shape index: {}]   ;;  %s2318_s9 = inlined_call_operand.vmem [shape: f32[1,128], index: 9, kind: input, shape index: {}]   ;;  %s2319_s10 = inlined_call_operand.vmem [shape: f32[1,128], index: 10, kind: input, shape index: {}]   ;;  %s2320_s11 = inlined_call_operand.vmem [shape: f32[128,64], index: 11, kind: input, shape index: {}]   ;;  %s2321_s12 = inlined_call_operand.vmem [shape: f32[1,64], index: 12, kind: input, shape index: {}]   ;;  %s2322_s13 = inlined_call_operand.vmem [shape: f32[1,64], index: 13, kind: input, shape index: {}]   ;;  %s2323_s14 = inlined_call_operand.vmem [shape: f32[1,64], index: 14, kind: input, shape index: {}]   ;;  %s2324_s15 = inlined_call_operand.vmem [shape: f32[64,128], index: 15, kind: input, shape index: {}]   ;;  %s2325_s16 = inlined_call_operand.vmem [shape: f32[1,128], index: 16, kind: input, shape index: {}]   ;;  %s2326_s17 = inlined_call_operand.hbm [shape: f32[40,128], index: 17, kind: output, shape index: {}]  }
   0x1   :  { %2338 = sst [smem:[#allocation14_spill]] %s2309_s0 }
   0x2   :  { %2339 = sst [smem:[#allocation15_spill]] %s2310_s1 }
   0x3   :  { %2340 = sst [smem:[#allocation16_spill]] %s2326_s17 }
   0x4   :  { %22 = vsyncpa [#allocation3], 0 }
   0x5   :  { %24 = vsyncpa [#allocation3 + $0x1], 0  ;;  %s1871_s24 = smov 0   ;;  %s1873_s25 = smov 0  }
   0x6   :  { %s1875_s26 = smov 0   ;;  %s1877_s27 = smov 0  }
   0x7 LB: > { %2341 = sst [smem:[#allocation5_spill]] %s1762_s24  ;;  %s1892_s28 = sadd.s32 4294967295, %s1774_s27   ;;  %s1774_s27 = sphi %s1877_s27, %s2362_s27   ;;  %s1770_s26 = sphi %s1875_s26, %s2364_s26   ;;  %s1766_s25 = sphi %s1873_s25, %s2366_s25   ;;  %s1762_s24 = sphi %s1871_s24, %s2365_s24  }
   0x8   : > { %2342 = sst [smem:[#allocation6_spill]] %s1770_s26  ;;  %s1326_s29 = sadd.s32 4294967294, %s1774_s27  }
   0x9   : > { %2343 = sst [smem:[#allocation7_spill]] %s1774_s27  ;;  %s1896_s0 = sadd.s32 1, %s1774_s27  }
   0xa   : > { %2344 = sst [smem:[#allocation8_spill]] %s1892_s28  ;;  %s399_s30 = sadd.s32 1, %s1770_s26 }
   0xb   : > { %2345 = sst [smem:[#allocation9_spill]] %s1896_s0  ;;  %s396_s18 = ssub.s32 %s1774_s27, %s1896_s0 }
   0xc   : > { %p409_p0 = scmp.ne.s32.totalorder %s1770_s26, %s1766_s25  ;;  %p397_p1 = scmp.eq.s32.totalorder %s396_s18, 0 }
   0xd   : > { %p410_p2 = scmp.eq.s32.totalorder %s1892_s28, 2  ;;  %p415_p3 = scmp.ne.s32.totalorder %s1766_s25, %s1762_s24 }
   0xe   : > { %p416_p4 = scmp.eq.s32.totalorder %s1326_s29, 2  ;;  %p1329_p7 = scmp.ge.s32.totalorder %s1774_s27, 1 }
   0xf   : > { %s1907_s19 = scalar_select %p397_p1, %s1770_s26, %s399_s30  }
  0x10   : > { %p1909_p5 = por %p410_p2, %p409_p0  ;;  %p1913_p6 = por %p416_p4, %p415_p3 }
  0x11   : > { %2346 = sst [smem:[#allocation10_spill]] %s1907_s19  ;;  %p499_p8 = scmp.lt.s32.totalorder %s1774_s27, 4 }
  0x12   : > { %s2347_s1 = scalar_select %p1909_p5, 1, 0 }
  0x13   : > { %s2349_s20 = scalar_select %p1913_p6, 1, 0 }
  0x14   : > { %2348 = sst [smem:[#allocation11_spill]] %s2347_s1  ;;  %p500_p9 = pnand %p1329_p7, %p499_p8 }
  0x15   : > { %2350 = sst [smem:[#allocation12_spill]] %s2349_s20 }
  0x16   : > { %503 = sbr.rel (%p500_p9) target bundleno = 2329 (0x919), region = 88 }
  0x1d   : > { %s1920_s21 = sshll.u32 %s1892_s28, 1  ;;  %s2352_s29 = sld [smem:[#allocation15_spill]]  ;;  %v1776_v7 = vmov 0.0   ;;  %v712_v20 = vld [vmem:[%s2312_s3 + $0x80] sm:$0xff]  ;;  %v713_v21 = vld [vmem:[%s2312_s3 + $0x88] sm:$0xff]  ;;  %v714_v25 = vld [vmem:[%s2312_s3 + $0x90] sm:$0xff] }
  0x1e   : > { %2351 = sst [smem:[#allocation13_spill]] %s1920_s21  ;;  %p560_p10 = scmp.lt.s32.totalorder %s1920_s21, 4  ;;  %679 = vmatprep.mubr.f32.mxu0 %v1776_v7  ;;  %v1546_v22 = vpack.c.bf16 %v713_v21, %v712_v20  ;;  %v696_v23 = vld [vmem:[%s2312_s3] sm:$0xff]  ;;  %v697_v24 = vld [vmem:[%s2312_s3 + $0x8] sm:$0xff]  ;;  %v715_v29 = vld [vmem:[%s2312_s3 + $0x98] sm:$0xff]  ;;  %vm610_vm0 = vcmask 523264  }
  0x1f   : > { %v1548_v28 = vpack.c.bf16 %v697_v24, %v696_v23  ;;  %s1777_s23 = smov 64   ;;  %v1550_v31 = vpack.c.bf16 %v715_v29, %v714_v25  ;;  %v698_v32 = vld [vmem:[%s2312_s3 + $0x10] sm:$0xff]  ;;  %v699_v33 = vld [vmem:[%s2312_s3 + $0x18] sm:$0xff]  ;;  %v716_v34 = vld [vmem:[%s2312_s3 + $0xa0] sm:$0xff]  ;;  %s552_s0 = sand.u32 1, %s1766_s25  }
  0x20   : > { %s561_s27 = scalar_select %p560_p10, %s1920_s21, 4  ;;  %1547 = vmatprep.subr.bf16.mxu1 %v1546_v22  ;;  %v717_v38 = vld [vmem:[%s2312_s3 + $0xa8] sm:$0xff]  ;;  %v1552_v39 = vpack.c.bf16 %v699_v33, %v698_v32  ;;  %v700_v41 = vld [vmem:[%s2312_s3 + $0x20] sm:$0xff]  ;;  %v718_v44 = vld [vmem:[%s2312_s3 + $0xb0] sm:$0xff] }
  0x21   : > { %s2353_s21 = sld [smem:[#allocation14_spill]]  ;;  %1549 = vmatpush3.bf16.msra.mxu1 %v1548_v28  ;;  %v1554_v40 = vpack.c.bf16 %v717_v38, %v716_v34  ;;  %v701_v42 = vld [vmem:[%s2312_s3 + $0x28] sm:$0xff]  ;;  %v719_v45 = vld [vmem:[%s2312_s3 + $0xb8] sm:$0xff]  ;;  %v702_v48 = vld [vmem:[%s2312_s3 + $0x30] sm:$0xff]  ;;  %s1330_s24 = sshll.u32 %s552_s0, 4 }
  0x22   : > { %s1332_s20 = sshll.u32 %s561_s27, 3  ;;  %1551 = vmatprep.subr.bf16.mxu1 %v1550_v31  ;;  %v1556_v46 = vpack.c.bf16 %v701_v42, %v700_v41  ;;  %v1558_v47 = vpack.c.bf16 %v719_v45, %v718_v44  ;;  %v703_v49 = vld [vmem:[%s2312_s3 + $0x38] sm:$0xff]  ;;  %v720_v50 = vld [vmem:[%s2312_s3 + $0xc0] sm:$0xff]  ;;  %v721_v51 = vld [vmem:[%s2312_s3 + $0xc8] sm:$0xff]  ;;  %s554_s22 = scalar_lea.vmem [#allocation2], %s1330_s24 }
  0x23   : > { %v577_v0 = vld [vmem:[%s2352_s29 + $0x8] sm:$0xff]  ;;  %v579_v1 = vld [vmem:[%s2352_s29 + $0x18] sm:$0xff]  ;;  %v576_v2 = vld [vmem:[%s2352_s29] sm:$0xff]  ;;  %v1560_v52 = vpack.c.bf16 %v703_v49, %v702_v48  ;;  %v1562_v53 = vpack.c.bf16 %v721_v51, %v720_v50  ;;  %s2249_s17 = scalar_lea.sflag [#allocation3], %s552_s0 }
  0x24   : > { %v1530_v3 = vpack.c.bf16 %v579_v1, %v577_v0  ;;  %v578_v4 = vld [vmem:[%s2352_s29 + $0x10] sm:$0xff]  ;;  %v581_v5 = vld [vmem:[%s2352_s29 + $0x28] sm:$0xff]  ;;  %v583_v6 = vld [vmem:[%s2352_s29 + $0x38] sm:$0xff] }
  0x25   : > { %v1532_v8 = vpack.c.bf16 %v578_v4, %v576_v2  ;;  %v1534_v9 = vpack.c.bf16 %v583_v6, %v581_v5  ;;  %v580_v10 = vld [vmem:[%s2352_s29 + $0x20] sm:$0xff]  ;;  %v582_v11 = vld [vmem:[%s2352_s29 + $0x30] sm:$0xff]  ;;  %v585_v12 = vld [vmem:[%s2352_s29 + $0x48] sm:$0xff]  ;;  %1553 = vmatpush3.bf16.msra.mxu1 %v1552_v39 }
  0x26   : > { %1531 = vmatprep.subr.bf16.mxu0 %v1530_v3  ;;  %v587_v13 = vld [vmem:[%s2352_s29 + $0x58] sm:$0xff]  ;;  %v1536_v14 = vpack.c.bf16 %v582_v11, %v580_v10  ;;  %v584_v15 = vld [vmem:[%s2352_s29 + $0x40] sm:$0xff]  ;;  %v586_v16 = vld [vmem:[%s2352_s29 + $0x50] sm:$0xff]  ;;  %1555 = vmatprep.subr.bf16.mxu1 %v1554_v40 }
  0x27   : > { %1533 = vmatpush1.bf16.msra.mxu0 %v1532_v8  ;;  %v589_v17 = vld [vmem:[%s2352_s29 + $0x68] sm:$0xff]  ;;  %v1538_v18 = vpack.c.bf16 %v587_v13, %v585_v12  ;;  %v591_v19 = vld [vmem:[%s2352_s29 + $0x78] sm:$0xff]  ;;  %s563_s30 = scalar_lea.vmem %s2353_s21, %s1332_s20  ;;  %v588_v27 = vld [vmem:[%s2352_s29 + $0x60] sm:$0xff]  ;;  %v1540_v30 = vpack.c.bf16 %v586_v16, %v584_v15  ;;  %v594_v13 = vlaneseq }
  0x28   : > { %1535 = vmatprep.subr.bf16.mxu0 %v1534_v9  ;;  %v1985_v26 = vld [vmem:[%s563_s30] sm:$0xff]  ;;  %v2004_v35 = vld [vmem:[%s563_s30 + $0x8] sm:$0xff]  ;;  %v1542_v36 = vpack.c.bf16 %v591_v19, %v589_v17  ;;  %v590_v37 = vld [vmem:[%s2352_s29 + $0x70] sm:$0xff] }
  0x29   : > { %606 = vrot.lane.b32.xlu0 %v1985_v26, %s1777_s23  ;;  %v1544_v43 = vpack.c.bf16 %v590_v37, %v588_v27  ;;  %1557 = vmatpush3.bf16.msra.mxu1 %v1556_v46  ;;  %v704_v54 = vld [vmem:[%s2312_s3 + $0x40] sm:$0xff]  ;;  %v705_v55 = vld [vmem:[%s2312_s3 + $0x48] sm:$0xff]  ;;  %v722_v56 = vld [vmem:[%s2312_s3 + $0xd0] sm:$0xff] }
  0x2a   : > { %1559 = vmatprep.subr.bf16.mxu1 %v1558_v47  ;;  %v723_v57 = vld [vmem:[%s2312_s3 + $0xd8] sm:$0xff]  ;;  %v1564_v58 = vpack.c.bf16 %v705_v55, %v704_v54  ;;  %v706_v60 = vld [vmem:[%s2312_s3 + $0x50] sm:$0xff]  ;;  %v724_v62 = vld [vmem:[%s2312_s3 + $0xe0] sm:$0xff] }
  0x2b   : > { %1537 = vmatpush1.bf16.msra.mxu0 %v1536_v14  ;;  %v1566_v59 = vpack.c.bf16 %v723_v57, %v722_v56  ;;  %v707_v61 = vld [vmem:[%s2312_s3 + $0x58] sm:$0xff]  ;;  %v725_v63 = vld [vmem:[%s2312_s3 + $0xe8] sm:$0xff]  ;;  %v708_v4 = vld [vmem:[%s2312_s3 + $0x60] sm:$0xff]  ;;  %v595_v14 = vshrl.u32 %v594_v13, 7 }
  0x2c   : > { %1539 = vmatprep.subr.bf16.mxu0 %v1538_v18  ;;  %v1568_v0 = vpack.c.bf16 %v707_v61, %v706_v60  ;;  %v1570_v1 = vpack.c.bf16 %v725_v63, %v724_v62  ;;  %v709_v5 = vld [vmem:[%s2312_s3 + $0x68] sm:$0xff]  ;;  %v726_v8 = vld [vmem:[%s2312_s3 + $0xf0] sm:$0xff]  ;;  %v711_v11 = vld [vmem:[%s2312_s3 + $0x78] sm:$0xff] }
  0x2d   : > { %608 = vrot.lane.b32.xlu0 %v2004_v35, %s1777_s23  ;;  %1561 = vmatpush3.bf16.msra.mxu1 %v1560_v52  ;;  %v1572_v6 = vpack.c.bf16 %v709_v5, %v708_v4  ;;  %v710_v10 = vld [vmem:[%s2312_s3 + $0x70] sm:$0xff]  ;;  %v596_v15 = vsub.s32 0, %v595_v14  ;;  %v592_v16 = vld [vmem:[%s2311_s2] sm:$0x3]  ;;  %v600_v17 = vsub.s32 1, %v595_v14  ;;  %v862_v48 = vld [vmem:[%s2316_s7 + $0x8] sm:$0xff] }
  0x2e   : > { %1563 = vmatprep.subr.bf16.mxu1 %v1562_v53  ;;  %v1576_v12 = vpack.c.bf16 %v711_v11, %v710_v10  ;;  %v861_v47 = vld [vmem:[%s2316_s7] sm:$0xff]  ;;  %v863_v49 = vld [vmem:[%s2316_s7 + $0x10] sm:$0xff]  ;;  %v866_v60 = vld [vmem:[%s2316_s7 + $0x28] sm:$0xff] }
  0x2f   : > { %1541 = vmatpush1.bf16.msra.mxu0 %v1540_v30  ;;  %v597_v18 = vrot.slane %v592_v16, %v596_v15  ;;  %v601_v19 = vrot.slane %v592_v16, %v600_v17  ;;  %v1578_v50 = vpack.c.bf16 %v862_v48, %v861_v47  ;;  %v867_v62 = vld [vmem:[%s2316_s7 + $0x30] sm:$0xff]  ;;  %v868_v63 = vld [vmem:[%s2316_s7 + $0x38] sm:$0xff] }
  0x30   : > { %1543 = vmatprep.subr.bf16.mxu0 %v1542_v36  ;;  %v1335_v36 = vld [vmem:[%s2313_s4] ss:$0 sm:$0xff]  ;;  %v871_v4 = vld [vmem:[%s2316_s7 + $0x50] sm:$0xff]  ;;  %v872_v5 = vld [vmem:[%s2316_s7 + $0x58] sm:$0xff] }
  0x31   : > { %1565 = vmatpush3.bf16.msra.mxu1 %v1564_v58  ;;  %v875_v10 = vld [vmem:[%s2316_s7 + $0x70] sm:$0xff]  ;;  %v876_v11 = vld [vmem:[%s2316_s7 + $0x78] sm:$0xff] }
  0x32   : > { %1567 = vmatprep.subr.bf16.mxu1 %v1566_v59  ;;  %v865_v59 = vld [vmem:[%s2316_s7 + $0x20] sm:$0xff] }
  0x33   : > { %1545 = vmatpush1.bf16.msra.mxu0 %v1544_v43  ;;  %v1586_v61 = vpack.c.bf16 %v866_v60, %v865_v59  ;;  %v1011_v59 = vld [vmem:[%s2320_s11 + $0x50] sm:$0xff]  ;;  %v1012_v60 = vld [vmem:[%s2320_s11 + $0x58] sm:$0xff] }
  0x34   : > { %1579 = vmatprep.subr.bf16.mxu0 %v1578_v50 }
  0x35   : > { %1569 = vmatpush3.bf16.msra.mxu1 %v1568_v0  ;;  %v1590_v0 = vpack.c.bf16 %v868_v63, %v867_v62  ;;  %v1013_v62 = vld [vmem:[%s2320_s11 + $0x60] sm:$0xff]  ;;  %v1014_v63 = vld [vmem:[%s2320_s11 + $0x68] sm:$0xff] }
  0x36   : > { %1571 = vmatprep.subr.bf16.mxu1 %v1570_v1  ;;  %v869_v1 = vld [vmem:[%s2316_s7 + $0x40] sm:$0xff] }
  0x39   : > { %1573 = vmatpush3.bf16.msra.mxu1 %v1572_v6  ;;  %v873_v6 = vld [vmem:[%s2316_s7 + $0x60] sm:$0xff] }
  0x9b   : > { %v607_v2 = vpop.permute.xlu0 %606 }
  0x9c   : > { %1333 = vmatmul.mubr.msk.f32.vlgmr.msra.gmra.mrb[0].mxu0 %vm610_vm0, %v607_v2  ;;  %v870_v2 = vld [vmem:[%s2316_s7 + $0x48] sm:$0xff] }
  0x9d   : > { %685 = vmatprep.mubr.f32.mxu0 %v1776_v7  ;;  %v727_v7 = vld [vmem:[%s2312_s3 + $0xf8] sm:$0xff]  ;;  %1581 = vmatpush3.bf16.msra.mxu0 %v1578_v50 }
  0x9e   : > { %v1574_v9 = vpack.c.bf16 %v727_v7, %v726_v8  ;;  %v1598_v8 = vpack.c.bf16 %v872_v5, %v871_v4  ;;  %v874_v7 = vld [vmem:[%s2316_s7 + $0x68] sm:$0xff] }
  0x9f   : > { %v609_v3 = vpop.permute.xlu0 %608 }
  0xa0   : > { %1334 = vmatmul.mubr.msk.f32.gmra.mrb[2].mxu0 %vm610_vm0, %v609_v3  ;;  %1575 = vmatprep.subr.bf16.mxu1 %v1574_v9  ;;  %v1594_v3 = vpack.c.bf16 %v870_v2, %v869_v1  ;;  %v1602_v9 = vpack.c.bf16 %v874_v7, %v873_v6  ;;  %v1015_v1 = vld [vmem:[%s2320_s11 + $0x70] sm:$0xff]  ;;  %v1016_v2 = vld [vmem:[%s2320_s11 + $0x78] sm:$0xff] }
  0xa1   : > { %1577 = vmatpush3.bf16.msra.mxu1 %v1576_v12  ;;  %v1606_v12 = vpack.c.bf16 %v876_v11, %v875_v10  ;;  %v1339_v11 = vld [vmem:[%s2318_s9] ss:$0 sm:$0xff] }
 0x16f   : > { %v681_v20 = vpop.f32.mrb[0].mxu0 }
 0x170   : > { %v682_v21 = vadd.f32 %v681_v20, %v597_v18  ;;  %v683_v22 = vpop.f32.mrb[1].mxu0  ;;  %v1336_v20 = vld [vmem:[%s2314_s5] ss:$0 sm:$0xff] }
 0x171   : > { %v684_v23 = vadd.f32 %v683_v22, %v601_v19  ;;  %v1337_v22 = vld [vmem:[%s2315_s6] ss:$0 sm:$0xff] }
 0x172   : > { %v692_v27 = vmax.f32 %v682_v21, 0.0 }
 0x173   : > { %v687_v24 = vpop.f32.mrb[2].mxu0  ;;  %v693_v25 = vmax.f32 %v684_v23, 0.0 }
 0x174   : > { %v688_v28 = vadd.f32 %v687_v24, %v597_v18  ;;  %v689_v29 = vpop.f32.mrb[3].mxu0 }
 0x175   : > { %v690_v30 = vadd.f32 %v689_v29, %v601_v19  ;;  %799 = vmatprep.mubr.f32.mxu1 %v693_v25 }
 0x176   : > { %800 = vmatmul.mubr.f32.vlgmr.msra.gmra.mrb[0].mxu1 %v692_v27  ;;  %v694_v32 = vmax.f32 %v688_v28, 0.0 }
 0x177   : > { %v695_v31 = vmax.f32 %v690_v30, 0.0  ;;  %v1338_v30 = vld [vmem:[%s2317_s8] ss:$0 sm:$0xff] }
 0x179   : > { %804 = vmatprep.mubr.f32.mxu1 %v695_v31 }
 0x17a   : > { %805 = vmatmul.mubr.f32.gmra.mrb[2].mxu1 %v694_v32 }
 0x249   : > { %v1389_v33 = vpop.f32.mrb[0].mxu1 }
 0x24a   : > { %v1390_v34 = vpop.f32.mrb[1].mxu1 }
 0x24b   : > { %v1391_v37 = vadd.f32 %v1390_v34, %v1389_v33 }
 0x24d   : > { %v1392_v38 = vpop.f32.mrb[2].mxu1  ;;  %v802_v39 = vadd.f32 %v1391_v37, %v1335_v36 }
 0x24e   : > { %v1393_v40 = vpop.f32.mrb[3].mxu1 }
 0x24f   : > { %v1394_v41 = vadd.f32 %v1393_v40, %v1392_v38  ;;  %812 = vrot.lane.b32.xlu1 %v802_v39, %s1777_s23  ;;  %v1001_v38 = vld [vmem:[%s2320_s11] sm:$0xff]  ;;  %v1002_v39 = vld [vmem:[%s2320_s11 + $0x8] sm:$0xff]  ;;  %v1003_v40 = vld [vmem:[%s2320_s11 + $0x10] sm:$0xff] }
 0x251   : > { %v807_v42 = vadd.f32 %v1394_v41, %v1335_v36  ;;  %v1610_v41 = vpack.c.bf16 %v1002_v39, %v1001_v38 }
 0x253   : > { %814 = vrot.lane.b32.xlu1 %v807_v42, %s1777_s23  ;;  %v1004_v42 = vld [vmem:[%s2320_s11 + $0x18] sm:$0xff]  ;;  %1611 = vmatprep.subr.bf16.mxu1 %v1610_v41  ;;  %s2355_s23 = sld [smem:[#allocation13_spill]] (%p1909_p5) }
 0x254   : > { %1613 = vmatpush3.bf16.msra.mxu1 %v1610_v41  ;;  %v1146_v41 = vld [vmem:[%s2324_s15] sm:$0xff] }
 0x259   : > { %s1253_s20 = ssub.s32 (%p1909_p5), 5, %s2355_s23 }
 0x25a   : > { %p1254_p11 = scmp.lt.s32.totalorder (%p1909_p5), %s1253_s20, 2 }
 0x2c1   : > { %v813_v43 = vpop.permute.xlu1 %812 }
 0x2c2   : > { %v818_v44 = vsel %vm610_vm0, %v1985_v26, %v813_v43  ;;  %v864_v26 = vld [vmem:[%s2316_s7 + $0x18] sm:$0xff]  ;;  %v1614_v43 = vpack.c.bf16 %v1004_v42, %v1003_v40  ;;  %v1147_v42 = vld [vmem:[%s2324_s15 + $0x8] sm:$0xff] }
 0x2c3   : > { %820 = vadd.xlane.f32.xlu0 %v818_v44  ;;  %v1582_v51 = vpack.c.bf16 %v864_v26, %v863_v49 }
 0x2c4   : > { %1615 = vmatprep.subr.bf16.mxu1 %v1614_v43 }
 0x2c5   : > { %v815_v45 = vpop.permute.xlu1 %814  ;;  %1583 = vmatprep.subr.bf16.mxu0 %v1582_v51  ;;  %1617 = vmatpush3.bf16.msra.mxu1 %v1614_v43  ;;  %v1642_v43 = vpack.c.bf16 %v1147_v42, %v1146_v41 }
 0x2c6   : > { %v819_v46 = vsel %vm610_vm0, %v2004_v35, %v815_v45  ;;  %1585 = vmatpush3.bf16.msra.mxu0 %v1582_v51  ;;  %v1006_v45 = vld [vmem:[%s2320_s11 + $0x28] sm:$0xff] }
 0x2c7   : > { %822 = vadd.xlane.f32.xlu1 %v819_v46  ;;  %1587 = vmatprep.subr.bf16.mxu0 %v1586_v61 }
 0x2ca   : > { %1589 = vmatpush3.bf16.msra.mxu0 %v1586_v61  ;;  %v1630_v61 = vpack.c.bf16 %v1012_v60, %v1011_v59 }
 0x2cb   : > { %1591 = vmatprep.subr.bf16.mxu0 %v1590_v0 }
 0x2ce   : > { %1593 = vmatpush3.bf16.msra.mxu0 %v1590_v0  ;;  %v1634_v0 = vpack.c.bf16 %v1014_v63, %v1013_v62  ;;  %v1343_v63 = vld [vmem:[%s2323_s14] ss:$0 sm:$0xff] }
 0x2cf   : > { %1595 = vmatprep.subr.bf16.mxu0 %v1594_v3 }
 0x2d2   : > { %1597 = vmatpush3.bf16.msra.mxu0 %v1594_v3  ;;  %v1638_v3 = vpack.c.bf16 %v1016_v2, %v1015_v1 }
 0x2d3   : > { %1599 = vmatprep.subr.bf16.mxu0 %v1598_v8 }
 0x2d6   : > { %1601 = vmatpush3.bf16.msra.mxu0 %v1598_v8 }
 0x2d7   : > { %1603 = vmatprep.subr.bf16.mxu0 %v1602_v9 }
 0x2da   : > { %1605 = vmatpush3.bf16.msra.mxu0 %v1602_v9 }
 0x2db   : > { %1607 = vmatprep.subr.bf16.mxu0 %v1606_v12 }
 0x2de   : > { %1609 = vmatpush3.bf16.msra.mxu0 %v1606_v12 }
 0x2df   : > { %1643 = vmatprep.subr.bf16.mxu0 %v1642_v43 }
 0x350   : > { %v821_v35 = vpop.xlane.xlu0 %820 }
 0x351   : > { %v825_v52 = vmul.f32 0.0078125, %v821_v35 }
 0x353   : > { %v827_v53 = vsub.f32 %v818_v44, %v825_v52  ;;  %v1005_v44 = vld [vmem:[%s2320_s11 + $0x20] sm:$0xff] }
 0x354   : > { %v823_v54 = vpop.xlane.xlu1 %822 }
 0x355   : > { %v826_v55 = vmul.f32 0.0078125, %v823_v54  ;;  %v829_v56 = vmul.f32 %v827_v53, %v827_v53  ;;  %v1008_v54 = vld [vmem:[%s2320_s11 + $0x38] sm:$0xff] }
 0x357   : > { %v828_v57 = vsub.f32 %v819_v46, %v826_v55  ;;  %831 = vadd.xlane.f32.xlu0 %v829_v56  ;;  %v1618_v46 = vpack.c.bf16 %v1006_v45, %v1005_v44  ;;  %v1009_v56 = vld [vmem:[%s2320_s11 + $0x40] sm:$0xff]  ;;  %v1148_v44 = vld [vmem:[%s2324_s15 + $0x10] sm:$0xff]  ;;  %v1149_v45 = vld [vmem:[%s2324_s15 + $0x18] sm:$0xff] }
 0x359   : > { %v830_v58 = vmul.f32 %v828_v57, %v828_v57  ;;  %1619 = vmatprep.subr.bf16.mxu1 %v1618_v46 }
 0x35a   : > { %1621 = vmatpush3.bf16.msra.mxu1 %v1618_v46  ;;  %v1646_v46 = vpack.c.bf16 %v1149_v45, %v1148_v44 }
 0x35b   : > { %833 = vadd.xlane.f32.xlu0 %v830_v58 }
 0x3e4   : > { %v832_v13 = vpop.xlane.xlu0 %831 }
 0x3e5   : > { %v835_v14 = vmul.f32 0.0078125, %v832_v13 }
 0x3e7   : > { %v837_v15 = vadd.f32 1e-05, %v835_v14 }
 0x3e8   : > { %v834_v16 = vpop.xlane.xlu0 %833 }
 0x3e9   : > { %1700 = vrsqrt.f32 %v837_v15  ;;  %v836_v17 = vmul.f32 0.0078125, %v834_v16  ;;  %v1340_v16 = vld [vmem:[%s2319_s10] ss:$0 sm:$0xff] }
 0x3eb   : > { %v838_v18 = vadd.f32 1e-05, %v836_v17 }
 0x3ed   : > { %1702 = vrsqrt.f32 %v838_v18 }
 0x3f3   : > { %v1701_v19 = vpop.eup %1700 }
 0x3f4   : > { %v841_v21 = vmul.f32 %v1701_v19, %v827_v53  ;;  %v1007_v53 = vld [vmem:[%s2320_s11 + $0x30] sm:$0xff] }
 0x3f5   : > { %v1622_v55 = vpack.c.bf16 %v1008_v54, %v1007_v53 }
 0x3f6   : > { %v850_v23 = vmul.f32 %v1336_v20, %v841_v21 }
 0x3f7   : > { %v1703_v24 = vpop.eup %1702  ;;  %1623 = vmatprep.subr.bf16.mxu1 %v1622_v55 }
 0x3f8   : > { %v842_v25 = vmul.f32 %v1703_v24, %v828_v57  ;;  %v859_v27 = vadd.f32 %v1337_v22, %v850_v23  ;;  %1625 = vmatpush3.bf16.msra.mxu1 %v1622_v55  ;;  %v1010_v57 = vld [vmem:[%s2320_s11 + $0x48] sm:$0xff] }
 0x3f9   : > { %v1626_v58 = vpack.c.bf16 %v1010_v57, %v1009_v56 }
 0x3fa   : > { %v851_v28 = vmul.f32 %v1336_v20, %v842_v25  ;;  %1473 = vmatprep.mubr.f32.mxu0 %v859_v27  ;;  %v1341_v20 = vld [vmem:[%s2321_s12] ss:$0 sm:$0xff] }
 0x3fb   : > { %1627 = vmatprep.subr.bf16.mxu1 %v1626_v58 }
 0x3fc   : > { %v860_v29 = vadd.f32 %v1337_v22, %v851_v28  ;;  %1629 = vmatpush3.bf16.msra.mxu1 %v1626_v58  ;;  %v1342_v58 = vld [vmem:[%s2322_s13] ss:$0 sm:$0xff] }
 0x3fd   : > { %1631 = vmatprep.subr.bf16.mxu1 %v1630_v61 }
 0x3fe   : > { %1474 = vmatmul.mubr.f32.vlgmr.msra.gmra.mrb[4].mxu0 %v860_v29 }
 0x3ff   : > { %1645 = vmatpush3.bf16.msra.mxu0 %v1642_v43 }
 0x400   : > { %1633 = vmatpush3.bf16.msra.mxu1 %v1630_v61  ;;  %1647 = vmatprep.subr.bf16.mxu0 %v1646_v46 }
 0x401   : > { %1635 = vmatprep.subr.bf16.mxu1 %v1634_v0 }
 0x403   : > { %1649 = vmatpush3.bf16.msra.mxu0 %v1646_v46 }
 0x404   : > { %1637 = vmatpush3.bf16.msra.mxu1 %v1634_v0 }
 0x405   : > { %1639 = vmatprep.subr.bf16.mxu1 %v1638_v3 }
 0x408   : > { %1641 = vmatpush3.bf16.msra.mxu1 %v1638_v3  ;;  %v1344_v3 = vld [vmem:[%s2325_s16] ss:$0 sm:$0xff] }
 0x4d1   : > { %v1475_v31 = vpop.f32.mrb[4].mxu0 }
 0x4d2   : > { %v956_v32 = vadd.f32 %v1475_v31, %v1338_v30  ;;  %v950_v33 = vpop.f32.mrb[5].mxu0 }
 0x4d3   : > { %v951_v34 = vadd.f32 %v1338_v30, %v950_v33 }
 0x4d4   : > { %v960_v36 = vmax.f32 %v956_v32, 0.0 }
 0x4d5   : > { %v959_v37 = vmax.f32 %v951_v34, 0.0 }
 0x4d6   : > { %963 = vadd.xlane.f32.xlu0 %v960_v36 }
 0x4d7   : > { %961 = vadd.xlane.f32.xlu1 %v959_v37 }
 0x563   : > { %v964_v47 = vpop.xlane.xlu0 %963 }
 0x564   : > { %v966_v48 = vmul.f32 0.0078125, %v964_v47  ;;  %v962_v49 = vpop.xlane.xlu1 %961  ;;  %v1150_v47 = vld [vmem:[%s2324_s15 + $0x20] sm:$0xff] }
 0x565   : > { %v965_v50 = vmul.f32 0.0078125, %v962_v49 }
 0x566   : > { %v968_v26 = vsub.f32 %v960_v36, %v966_v48  ;;  %v1151_v48 = vld [vmem:[%s2324_s15 + $0x28] sm:$0xff] }
 0x567   : > { %v967_v51 = vsub.f32 %v959_v37, %v965_v50  ;;  %v1650_v49 = vpack.c.bf16 %v1151_v48, %v1150_v47  ;;  %v1152_v50 = vld [vmem:[%s2324_s15 + $0x30] sm:$0xff] }
 0x568   : > { %v970_v35 = vmul.f32 %v968_v26, %v968_v26 }
 0x569   : > { %v969_v52 = vmul.f32 %v967_v51, %v967_v51  ;;  %1651 = vmatprep.subr.bf16.mxu0 %v1650_v49 }
 0x56a   : > { %973 = vadd.xlane.f32.xlu0 %v970_v35  ;;  %1653 = vmatpush3.bf16.msra.mxu0 %v1650_v49 }
 0x56b   : > { %971 = vadd.xlane.f32.xlu1 %v969_v52 }
 0x5f7   : > { %v974_v4 = vpop.xlane.xlu0 %973 }
 0x5f8   : > { %v976_v5 = vmul.f32 0.0078125, %v974_v4  ;;  %v972_v6 = vpop.xlane.xlu1 %971 }
 0x5f9   : > { %v975_v8 = vmul.f32 0.0078125, %v972_v6 }
 0x5fa   : > { %v978_v7 = vadd.f32 1e-05, %v976_v5 }
 0x5fb   : > { %v977_v9 = vadd.f32 1e-05, %v975_v8 }
 0x5fc   : > { %1704 = vrsqrt.f32 %v978_v7 }
 0x5fd   : > { %1706 = vrsqrt.f32 %v977_v9 }
 0x606   : > { %v1705_v10 = vpop.eup %1704 }
 0x607   : > { %v1707_v12 = vpop.eup %1706  ;;  %v982_v13 = vmul.f32 %v1705_v10, %v968_v26  ;;  %v1153_v26 = vld [vmem:[%s2324_s15 + $0x38] sm:$0xff] }
 0x608   : > { %v981_v14 = vmul.f32 %v1707_v12, %v967_v51  ;;  %v1654_v51 = vpack.c.bf16 %v1153_v26, %v1152_v50 }
 0x609   : > { %v991_v15 = vmul.f32 %v1339_v11, %v982_v13 }
 0x60a   : > { %v990_v17 = vmul.f32 %v1339_v11, %v981_v14  ;;  %1655 = vmatprep.subr.bf16.mxu0 %v1654_v51 }
 0x60b   : > { %v1000_v19 = vadd.f32 %v1340_v16, %v991_v15  ;;  %1657 = vmatpush3.bf16.msra.mxu0 %v1654_v51 }
 0x60c   : > { %v999_v18 = vadd.f32 %v1340_v16, %v990_v17 }
 0x60e   : > { %1508 = vmatprep.mubr.f32.mxu1 %v999_v18 }
 0x60f   : > { %1509 = vmatmul.mubr.f32.vlgmr.msra.gmra.mrb[4].mxu1 %v1000_v19 }
 0x6e2   : > { %v1510_v21 = vpop.f32.mrb[4].mxu1 }
 0x6e3   : > { %v1096_v22 = vadd.f32 %v1510_v21, %v1341_v20  ;;  %v1090_v23 = vpop.f32.mrb[5].mxu1 }
 0x6e4   : > { %v1091_v24 = vadd.f32 %v1341_v20, %v1090_v23 }
 0x6e5   : > { %v1100_v25 = vmax.f32 %v1096_v22, 0.0 }
 0x6e6   : > { %v1099_v27 = vmax.f32 %v1091_v24, 0.0 }
 0x6e7   : > { %v1104_v28 = vsel %vm610_vm0, %v1100_v25, 0.0 }
 0x6e8   : > { %1105 = vadd.xlane.f32.xlu0 %v1104_v28  ;;  %v1101_v29 = vsel %vm610_vm0, %v1099_v27, 0.0 }
 0x6e9   : > { %1102 = vadd.xlane.f32.xlu1 %v1101_v29 }
 0x775   : > { %v1106_v30 = vpop.xlane.xlu0 %1105 }
 0x776   : > { %v1109_v31 = vmul.f32 0.015625, %v1106_v30  ;;  %v1103_v32 = vpop.xlane.xlu1 %1102 }
 0x777   : > { %v1108_v33 = vmul.f32 0.015625, %v1103_v32 }
 0x778   : > { %v1111_v34 = vsub.f32 %v1100_v25, %v1109_v31 }
 0x779   : > { %v1110_v36 = vsub.f32 %v1099_v27, %v1108_v33 }
 0x77a   : > { %v1113_v37 = vmul.f32 %v1111_v34, %v1111_v34 }
 0x77b   : > { %v1112_v38 = vmul.f32 %v1110_v36, %v1110_v36 }
 0x77c   : > { %v1117_v39 = vsel %vm610_vm0, %v1113_v37, 0.0 }
 0x77d   : > { %1118 = vadd.xlane.f32.xlu0 %v1117_v39  ;;  %v1114_v40 = vsel %vm610_vm0, %v1112_v38, 0.0 }
 0x77e   : > { %1115 = vadd.xlane.f32.xlu1 %v1114_v40 }
 0x80a   : > { %v1119_v35 = vpop.xlane.xlu0 %1118 }
 0x80b   : > { %v1121_v52 = vmul.f32 0.015625, %v1119_v35  ;;  %v1116_v53 = vpop.xlane.xlu1 %1115 }
 0x80c   : > { %v1120_v54 = vmul.f32 0.015625, %v1116_v53 }
 0x80d   : > { %v1123_v55 = vadd.f32 1e-05, %v1121_v52 }
 0x80e   : > { %v1122_v56 = vadd.f32 1e-05, %v1120_v54 }
 0x80f   : > { %1708 = vrsqrt.f32 %v1123_v55 }
 0x810   : > { %1710 = vrsqrt.f32 %v1122_v56 }
 0x819   : > { %v1709_v57 = vpop.eup %1708 }
 0x81a   : > { %v1711_v59 = vpop.eup %1710  ;;  %v1127_v60 = vmul.f32 %v1709_v57, %v1111_v34 }
 0x81b   : > { %v1126_v61 = vmul.f32 %v1711_v59, %v1110_v36 }
 0x81c   : > { %v1136_v62 = vmul.f32 %v1342_v58, %v1127_v60 }
 0x81d   : > { %v1135_v0 = vmul.f32 %v1342_v58, %v1126_v61 }
 0x81e   : > { %v1145_v2 = vadd.f32 %v1343_v63, %v1136_v62 }
 0x81f   : > { %v1144_v1 = vadd.f32 %v1343_v63, %v1135_v0 }
 0x821   : > { %1527 = vmatprep.mubr.msk.f32.mxu0 %vm610_vm0, %v1144_v1 }
 0x822   : > { %1528 = vmatmul.mubr.msk.f32.vlgmr.msra.gmra.mrb[6].mxu0 %vm610_vm0, %v1145_v2 }
 0x8f3   : > { %1251 = sbr.rel (!%p1909_p5) target bundleno = 2329 (0x919), region = 92 }
 0x8f5   : > { %v1529_v4 = vpop.f32.mrb[6].mxu0 }
 0x8f6   : > { %v1239_v5 = vadd.f32 %v1529_v4, %v1344_v3  ;;  %v1233_v6 = vpop.f32.mrb[7].mxu0 }
 0x8f7   : > { %v1234_v8 = vadd.f32 %v1344_v3, %v1233_v6 }
 0x8f8   : > { %1243 = vst [vmem:[%s554_s22 + $0x8] sm:$0xff] %v1239_v5 }
 0x8f9   : > { %1242 = vst [vmem:[%s554_s22] sm:$0xff] %v1234_v8 }
 0x8fa   : > { %s2368_s20 = smov (!%p1254_p11, %s1253_s20), 2 }
 0x8fb   : > { %s2254_s30 = sshll.u32 %s2368_s20, 7 }
 0x8fc   : > { %s1258_s1 = ssub.s32 256, %s2254_s30 }
 0x8fd   : > { %1259 = vsyncadd %s2249_s17, %s1258_s1  ;;  %s2356_s26 = sld [smem:[#allocation8_spill]]  ;;  %p1350_p12 = scmp.ne.s32.totalorder %s2254_s30, 0 }
 0x8fe   : > { %s2357_s24 = sld [smem:[#allocation16_spill]]  ;;  %s1264_s21 = sshll.u32 %s554_s22, 4  ;;  %s2265_s21 = int_to_ptr.vmem [resolvable:$true] %s1264_s21 }
 0x8ff   : > { %s1712_s23 = scalar_lea.vmem %s2265_s21, %s2254_s30  ;;  %s1778_s20 = smov [#allocation2]  }
 0x900   : > { %p1713_p13 = scmp.ne.s32.totalorder %s2265_s21, %s1712_s23  ;;  %s1716_s1 = sshll.u32 %s1778_s20, 4  ;;  %s1717_s1 = int_to_ptr.vmem [resolvable:$false] %s1716_s1 }
 0x901   : > { %p1719_p2 = scmp.lt.s32.totalorder %s2265_s21, %s1717_s1 }
 0x902   : > { %p1714_p0 = pnand %p1713_p13, %p1350_p12 }
 0x903   : > { %s1356_s19 = sshll.u32 %s2356_s26, 8  ;;  %s1718_s26 = scalar_lea.vmem %s1717_s1, 512 }
 0x904   : > { %s2358_s18 = smov %s2357_s24  ;;  %s2263_s28 = scalar_lea.hbm %s2357_s24, %s1356_s19 }
 0x905   : > { %p1715_p1 = pneg %p1714_p0  ;;  %p1720_p3 = scmp.lt.s32.totalorder %s1718_s26, %s1712_s23 }
 0x907   : > { %p1721_p4 = por %p1720_p3, %p1719_p2 }
 0x909   : > { %p1722_p5 = pnand %p1721_p4, %p1715_p1 }
 0x90b   : > { %1725 = shalt.err (!%p1722_p5)
}
 0x90c   : > { %s1726_s22 = scalar_lea.hbm %s2263_s28, %s2254_s30  ;;  %s1730_s0 = scalar_lea.hbm %s2358_s18, 640 }
 0x90d   : > { %p1727_p7 = scmp.ne.s32.totalorder %s2263_s28, %s1726_s22  ;;  %p1731_p10 = scmp.lt.u32.totalorder %s2263_s28, %s2358_s18 }
 0x90e   : > { %p1732_p11 = scmp.lt.u32.totalorder %s1730_s0, %s1726_s22  ;;  %p1734_p0 = scmp.lt.u32.totalorder %s1726_s22, %s2263_s28 }
 0x90f   : > { %p1728_p8 = pnand %p1727_p7, %p1350_p12 }
 0x910   : > { %p1733_p13 = por %p1732_p11, %p1731_p10 }
 0x911   : > { %p1729_p9 = pneg %p1728_p8 }
 0x912   : > { %p1735_p1 = por %p1734_p0, %p1733_p13 }
 0x914   : > { %p1736_p2 = pnand %p1735_p1, %p1729_p9 }
 0x916   : > { %1739 = shalt.err (!%p1736_p2)
}
 0x917   : > { %s1779_s20 = smov 128   ;;  %s1780_s1 = smov 8  }
 0x918   : > { %1270 = dma.vmem_to_hbm [thread:$0]  (%p1350_p12), %s2265_s21, %s2254_s30, %s2263_s28, %s2249_s17, %s1779_s20, %s1779_s20, %s1780_s1  }
 0x919 PF: > { %s2359_s26 = sld [smem:[#allocation7_spill]]  ;;  %s2360_s19 = sld [smem:[#allocation5_spill]] }
 0x91f   : > { %p1663_p3 = scmp.ge.s32.totalorder %s2359_s26, 2  ;;  %s1279_s0 = sand.u32 1, %s2360_s19  }
 0x920   : > { %s1280_s22 = scalar_lea.sflag [#allocation3], %s1279_s0 }
 0x921   : > { %p1660_p4 = pnand %p1663_p3, %p1913_p6 }
 0x923   : > { %1757 = dma.done.wait (!%p1660_p4), %s1280_s22, 256  }
 0x924   : > { %1759 = vsyncadd (!%p1660_p4), %s1280_s22, 4294967040  ;;  %s2362_s27 = sld [smem:[#allocation9_spill]]  ;;  %s2363_s23 = sld [smem:[#allocation6_spill]] }
 0x925   : > { %s2364_s26 = sld [smem:[#allocation10_spill]]  ;;  %s2365_s24 = smov %s1766_s25 }
 0x92a   : > { %p27_p5 = scmp.ge.s32.totalorder %s2362_s27, 5   ;;  %s2366_s25 = smov %s2363_s23 }
 0x92c   :  { %29 = sbr.rel (!%p27_p5) target bundleno = 7 (0x7), region = 123 }
 0x933   :  { %1285 = vsyncpa [#allocation3], 1 }
 0x934   :  { %1287 = vsyncpa [#allocation3 + $0x1], 1 }

</bundles_post_ra>
